<compile_context>
chip_gen: v7x
topology: tpu7x:2x2x1
jax: 0.10.0
libtpu: 0.0.40
codegen_flags: <defaults>
</compile_context>

<pallas_src>
import jax
import jax.numpy as jnp
from jax.experimental import pallas as pl
from jax.experimental.pallas import tpu as pltpu

LANES = 128
SUBLANES = 8
MAX_BLOCK_ROWS = 4096  # (4096, 128) f32 tile = 2 MiB


def _round_up(x, m):
    return ((x + m - 1) // m) * m


def affine_kernel(w_ref, b_ref, x_ref, o_ref):
    # w_ref, b_ref: (1, 1) scalars in SMEM; x_ref / o_ref: (block_rows, 128) VMEM tiles.
    w = w_ref[0, 0]
    b = b_ref[0, 0]
    o_ref[...] = x_ref[...] * w + b  # one fused VPU mul+add per vreg


def linear_forward(x, weight, bias):
    """x: (N, 1), weight: (1, 1), bias: (1,) -> (N, 1) f32.  out = x @ W.T + b."""
    n, in_dim = x.shape
    out_dim = weight.shape[0]
    assert in_dim == 1 and out_dim == 1, "kernel specialized for Linear(1, 1)"

    x = x.astype(jnp.float32)

    # ---- lane-dense layout: batch -> (rows_p, 128); round rows only to sublanes ----
    rows = pl.cdiv(n, LANES)
    rows_p = _round_up(max(rows, SUBLANES), SUBLANES)
    n_pad = rows_p * LANES
    aligned = (n_pad == n)  # n % 128 == 0 and rows % 8 == 0

    # Tile choice: biggest tile <= MAX_BLOCK_ROWS, but keep >= 2 grid steps whenever
    # possible so the "parallel" axis can shard across both v7x TensorCores.
    if rows_p >= 2 * SUBLANES:
        block_rows = min(MAX_BLOCK_ROWS, _round_up(pl.cdiv(rows_p, 2), SUBLANES))
    else:
        block_rows = rows_p
    grid = (pl.cdiv(rows_p, block_rows),)  # ragged last block handled by the pipeline

    if aligned:
        x2d = x.reshape(rows_p, LANES)           # pure view, no extra HBM traffic
    else:
        flat = jnp.pad(x.reshape(-1), (0, n_pad - n))
        x2d = flat.reshape(rows_p, LANES)

    w_smem = weight.reshape(1, 1).astype(jnp.float32)
    b_smem = bias.reshape(1, 1).astype(jnp.float32)

    out2d = pl.pallas_call(
        affine_kernel,
        out_shape=jax.ShapeDtypeStruct((rows_p, LANES), jnp.float32),
        grid=grid,
        in_specs=[
            pl.BlockSpec(memory_space=pltpu.MemorySpace.SMEM),    # weight scalar
            pl.BlockSpec(memory_space=pltpu.MemorySpace.SMEM),    # bias scalar
            pl.BlockSpec((block_rows, LANES), lambda i: (i, 0)),  # lane-dense x
        ],
        out_specs=pl.BlockSpec((block_rows, LANES), lambda i: (i, 0)),
        compiler_params=pltpu.CompilerParams(
            dimension_semantics=("parallel",),
            # When padding is unavoidable, let XLA fuse the pad/reshape producer into
            # the Pallas input pipeline instead of materializing a padded HBM copy.
            allow_input_fusion=([False, False, True] if not aligned else None),
        ),
        cost_estimate=pl.CostEstimate(
            flops=2 * rows_p * LANES,
            transcendentals=0,
            bytes_accessed=2 * rows_p * LANES * 4,
        ),
    )(w_smem, b_smem, x2d)

    # Undo layout glue outside the kernel (free reshape in the aligned case).
    if aligned:
        return out2d.reshape(n, out_dim)
    return out2d.reshape(-1)[:n].reshape(n, out_dim)


if __name__ == "__main__":
    input_dim = 1
    output_dim = 1

    key = jax.random.PRNGKey(0)
    kx, kw, kb, kx2 = jax.random.split(key, 4)

    weight = jax.random.uniform(kw, (output_dim, input_dim), jnp.float32,
                                minval=-1.0, maxval=1.0)
    bias = jax.random.uniform(kb, (output_dim,), jnp.float32,
                              minval=-1.0, maxval=1.0)

    # Small, unaligned batch (exercises the pad + input-fusion path).
    batch = 8
    x = jax.random.normal(kx, (batch, input_dim), jnp.float32)
    out = linear_forward(x, weight, bias)
    jax.block_until_ready(out)
    ref = x @ weight.T + bias
    assert out.shape == (batch, output_dim)
    assert jnp.allclose(out, ref, atol=1e-5), "mismatch vs reference (unaligned)"

    # Lane/sublane-aligned batch (exercises the zero-copy, multi-step grid path).
    batch2 = 2048
    x2 = jax.random.normal(kx2, (batch2, input_dim), jnp.float32)
    out2 = linear_forward(x2, weight, bias)
    jax.block_until_ready(out2)
    ref2 = x2 @ weight.T + bias
    assert out2.shape == (batch2, output_dim)
    assert jnp.allclose(out2, ref2, atol=1e-5), "mismatch vs reference (aligned)"

    print("KERNEL_OK")
</pallas_src>

<mosaic_0001>
module attributes {stable_mosaic.version = 11 : i64} {
  func.func @affine_kernel(%arg0: i32, %arg1: memref<1x1xf32, #tpu.memory_space<smem>>, %arg2: memref<1x1xf32, #tpu.memory_space<smem>>, %arg3: memref<8x128xf32, #tpu.memory_space<vmem>>, %arg4: memref<8x128xf32, #tpu.memory_space<vmem>>) attributes {dimension_semantics = [#tpu.dimension_semantics<parallel>], iteration_bounds = array<i64: 1>, scalar_prefetch = 0 : i64, scratch_operands = 0 : i64, tpu.core_type = #tpu.core_type<tc>, window_params = [{transform_indices = @transform_0, window_bounds = array<i64: 1, 1>}, {transform_indices = @transform_1, window_bounds = array<i64: 1, 1>}, {transform_indices = @transform_2, window_bounds = array<i64: 8, 128>}, {transform_indices = @transform_3, window_bounds = array<i64: 8, 128>}]} {
    %c0 = arith.constant 0 : index
    %c0_0 = arith.constant 0 : index
    %0 = memref.load %arg1[%c0, %c0_0] : memref<1x1xf32, #tpu.memory_space<smem>>
    %c0_1 = arith.constant 0 : index
    %c0_2 = arith.constant 0 : index
    %1 = memref.load %arg2[%c0_1, %c0_2] : memref<1x1xf32, #tpu.memory_space<smem>>
    %c0_3 = arith.constant 0 : index
    %c0_4 = arith.constant 0 : index
    %2 = vector.load %arg3[%c0_3, %c0_4] : memref<8x128xf32, #tpu.memory_space<vmem>>, vector<8x128xf32>
    %3 = vector.broadcast %0 : f32 to vector<8x128xf32>
    %4 = arith.mulf %2, %3 : vector<8x128xf32>
    %5 = vector.broadcast %1 : f32 to vector<8x128xf32>
    %6 = arith.addf %4, %5 : vector<8x128xf32>
    %c0_5 = arith.constant 0 : index
    %c0_6 = arith.constant 0 : index
    %7 = vector.load %arg4[%c0_5, %c0_6] : memref<8x128xf32, #tpu.memory_space<vmem>>, vector<8x128xf32>
    tpu.vector_store %arg4[%c0_5, %c0_6], %6 {strides = array<i32>} : memref<8x128xf32, #tpu.memory_space<vmem>>, vector<8x128xf32>,
    return
  }
  func.func @transform_0(%arg0: i32) -> (i32, i32) {
    %c0_i32 = arith.constant 0 : i32
    %c0_i32_0 = arith.constant 0 : i32
    %c0_i32_1 = arith.constant 0 : i32
    return %c0_i32, %c0_i32_0 : i32, i32
  }
  func.func @transform_1(%arg0: i32) -> (i32, i32) {
    %c0_i32 = arith.constant 0 : i32
    %c0_i32_0 = arith.constant 0 : i32
    %c0_i32_1 = arith.constant 0 : i32
    return %c0_i32, %c0_i32_0 : i32, i32
  }
  func.func @transform_2(%arg0: i32) -> (i32, i32) {
    %c0_i32 = arith.constant 0 : i32
    %c0_i32_0 = arith.constant 0 : i32
    return %arg0, %c0_i32 : i32, i32
  }
  func.func @transform_3(%arg0: i32) -> (i32, i32) {
    %c0_i32 = arith.constant 0 : i32
    %c0_i32_0 = arith.constant 0 : i32
    return %arg0, %c0_i32 : i32, i32
  }
}

</mosaic_0001>

<bundles_post_ra>
// kernel: tpu_custom_call.1
= control target key start
LH: loop header
LB: loop body
LE: loop exit
PB: predicated region body
PF: predicated region fallthrough
CT: control target
= control target key end

     0   :  { %10 = vsyncpa [#allocation5], 0  ;;  %s154_s0 = inlined_call_operand.<no memory space> [shape: f32[1,1], index: 0, kind: input, shape index: {}]   ;;  %s155_s1 = inlined_call_operand.<no memory space> [shape: f32[1,1], index: 1, kind: input, shape index: {}]   ;;  %s156_s2 = inlined_call_operand.hbm [shape: f32[8,128], index: 2, kind: input, shape index: {}]   ;;  %s157_s3 = inlined_call_operand.hbm [shape: f32[8,128], index: 3, kind: output, shape index: {}]  }
   0x1   :  { %11 = vsyncpa [#allocation6], 0  ;;  %s102_s12 = smov [#allocation4]   ;;  %s54_s16 = scalar_lea.hbm %s156_s2, 128 }
   0x2   :  { %s22_s13 = sshll.u32 %s102_s12, 4  ;;  %p55_p0 = scmp.ne.s32.totalorder %s156_s2, %s54_s16  ;;  %s23_s13 = int_to_ptr.vmem [resolvable:$true] %s22_s13 }
   0x3   :  { %p58_p1 = scmp.lt.u32.totalorder %s54_s16, %s156_s2 }
   0x5   :  { %p60_p2 = pnand %p58_p1, %p55_p0 }
   0x7   :  { %63 = shalt.err (!%p60_p2)
}
   0x8   :  { %s64_s21 = scalar_lea.vmem %s23_s13, 128  ;;  %p69_p4 = scmp.lt.s32.totalorder %s23_s13, %s23_s13 }
   0x9   :  { %p65_p3 = scmp.ne.s32.totalorder %s23_s13, %s64_s21  ;;  %p70_p5 = scmp.lt.s32.totalorder %s64_s21, %s64_s21 }
   0xb   :  { %p71_p6 = por %p70_p5, %p69_p4 }
   0xd   :  { %p72_p7 = pnand %p71_p6, %p65_p3 }
   0xf   :  { %75 = shalt.err (!%p72_p7)
}
  0x10   :  { %25 = dma.hbm_to_vmem [thread:$0]  %s156_s2, 128, %s23_s13, [#allocation5]  }
  0x11   :  { %98 = dma.done.wait [#allocation5], 128  }
  0x12   :  { %99 = vsyncadd [#allocation5], 4294967168  ;;  %v32_v0 = vstv %s154_s0  ;;  %v31_v1 = vld [vmem:[#allocation4] sm:$0xff]  ;;  %v34_v2 = vstv %s155_s1  ;;  %s103_s28 = smov [#allocation7]  }
  0x13   :  { %s43_s29 = sshll.u32 %s103_s28, 4  ;;  %v33_v3 = vmul.f32 %v32_v0, %v31_v1  ;;  %s44_s29 = int_to_ptr.vmem [resolvable:$true] %s43_s29 }
  0x14   :  { %s76_s30 = scalar_lea.vmem %s44_s29, 128  ;;  %p81_p9 = scmp.lt.s32.totalorder %s44_s29, %s44_s29 }
  0x15   :  { %v35_v4 = vadd.f32 %v34_v2, %v33_v3  ;;  %p77_p8 = scmp.ne.s32.totalorder %s44_s29, %s76_s30  ;;  %p82_p10 = scmp.lt.s32.totalorder %s76_s30, %s76_s30 }
  0x17   :  { %36 = vst [vmem:[#allocation7] sm:$0xff] %v35_v4  ;;  %p83_p11 = por %p82_p10, %p81_p9 }
  0x19   :  { %p84_p12 = pnand %p83_p11, %p77_p8 }
  0x1b   :  { %87 = shalt.err (!%p84_p12)
}
  0x1c   :  { %s88_s4 = scalar_lea.hbm %s157_s3, 128 }
  0x1d   :  { %p89_p13 = scmp.ne.s32.totalorder %s157_s3, %s88_s4  ;;  %p92_p0 = scmp.lt.u32.totalorder %s88_s4, %s157_s3 }
  0x1f   :  { %p94_p1 = pnand %p92_p0, %p89_p13 }
  0x21   :  { %97 = shalt.err (!%p94_p1)
}
  0x22   :  { %46 = dma.vmem_to_hbm [thread:$0]  %s44_s29, 128, %s157_s3, [#allocation6]  }
  0x23   :  { %100 = dma.done.wait [#allocation6], 128  }
  0x24   :  { %101 = vsyncadd [#allocation6], 4294967168 }
  0x25   :  { %50 = vsyncpa [#allocation5], 1 }
  0x26   :  { %51 = vsyncpa [#allocation6], 1 }

</bundles_post_ra>
